<compile_context>
chip_gen: v6e
topology: v6e:2x2x1
jax: 0.10.0
libtpu: 0.0.40
codegen_flags: <defaults>
</compile_context>

<pallas_src>
import functools
import math

import jax
import jax.numpy as jnp
from jax import lax
from jax.experimental import pallas as pl
from jax.experimental.pallas import tpu as pltpu

LANE = 128              # vreg lane width
SUBLANE = 8             # f32 sublane tile height
MAX_BLOCK_ROWS = 8192   # 8192*128*4B = 4 MiB per f32 input per buffer
LOG2 = math.log(2.0)


def _num_tensorcores_per_chip():
    """2 TensorCores per chip on v7x, otherwise 1 (v5e/v6e)."""
    try:
        kind = jax.devices()[0].device_kind.lower()
    except Exception:
        return 1
    return 2 if "v7" in kind else 1


_NUM_TC = _num_tensorcores_per_chip()


def _sublane_multiple(dtype):
    itemsize = jnp.dtype(dtype).itemsize
    return {4: 8, 2: 16, 1: 32}.get(itemsize, 8)


def _pick_strip(block_rows):
    for cand in (512, 256, 128, 64, 32, 16, 8):
        if block_rows % cand == 0:
            return cand
    return block_rows


def _make_kernel(block_rows, strip, steps_total, steps_per_chunk, need_guard):
    """Streaming reduction kernel for a fixed (static) tiling."""
    n_strips = block_rows // strip
    unroll = n_strips <= 16

    def kernel(x_ref, t_ref, out_ref):
        # grid = (chunks [core-parallel on v7x], steps per chunk [reduction])
        c = pl.program_id(0)
        s = pl.program_id(1)

        @pl.when(s == 0)
        def _init():
            out_ref[...] = jnp.zeros_like(out_ref)

        def _accumulate():
            def body(i, carry):
                bce_a, int_a, sig_a, tgt_a = carry
                r = pl.multiple_of(i * strip, strip)
                x = x_ref[pl.ds(r, strip), :].astype(jnp.float32)
                t = t_ref[pl.ds(r, strip), :].astype(jnp.float32)

                # Shared exp(-|x|): softplus (for BCE-with-logits) and sigmoid
                # (for Dice) both derive from one exponential.
                e = jnp.exp(-jnp.abs(x))
                softplus = jnp.log1p(e)                 # log(1 + exp(-|x|))
                d = 1.0 + e
                inv = pl.reciprocal(d, approx=True)     # EUP vrcp
                inv = inv * (2.0 - d * inv)             # one Newton step
                sig = jnp.where(x >= 0.0, inv, e * inv)  # sigmoid(x)

                # Stable BCEWithLogits: max(x,0) - x*t + log1p(exp(-|x|))
                bce = jnp.maximum(x, 0.0) - x * t + softplus

                def fold(v):
                    # sublane-aligned fold to an (8,128) partial: pure VPU adds
                    return v.reshape(-1, SUBLANE, LANE).sum(axis=0)

                return (bce_a + fold(bce),
                        int_a + fold(sig * t),
                        sig_a + fold(sig),
                        tgt_a + fold(t))

            zero = jnp.zeros((SUBLANE, LANE), jnp.float32)
            bce_a, int_a, sig_a, tgt_a = lax.fori_loop(
                0, n_strips, body, (zero, zero, zero, zero), unroll=unroll)

            out_ref[0, 0] += bce_a      # sum of per-element BCE-with-logits
            out_ref[0, 1] += int_a      # dice intersection
            out_ref[0, 2] += sig_a      # dice union (sigmoid(inputs))
            out_ref[0, 3] += tgt_a      # dice union (targets)

        if need_guard:
            # Only the clamped duplicate block (odd step count split across 2
            # chunks) is skipped; every real block is fully valid (HBM pad).
            blk = c * steps_per_chunk + s

            @pl.when(blk < steps_total)
            def _():
                _accumulate()
        else:
            _accumulate()

    return kernel


@functools.partial(jax.jit, static_argnames=("smooth",))
def loss2_pallas(inputs, targets, smooth=1e-6):
    """Loss2.forward:
         alpha * BCEWithLogitsLoss(mean) + beta * DiceLoss + gamma * TopoLoss
    """
    alpha, beta, gamma = 0.5, 1.0, 0.5

    n = inputs.size
    x = inputs.reshape(-1)
    t = targets.reshape(-1)

    # Row alignment must satisfy the sublane tiling of both dtypes
    # (f32 -> 8, bf16/f16 -> 16, int8/bool -> 32).
    row_align = max(_sublane_multiple(x.dtype), _sublane_multiple(t.dtype))

    rows_min = -(-n // LANE)
    steps_total = -(-rows_min // MAX_BLOCK_ROWS)
    block_rows = -(-rows_min // steps_total)
    block_rows = ((block_rows + row_align - 1) // row_align) * row_align
    rows = steps_total * block_rows                 # exact multiple of block_rows
    pad_elems = rows * LANE - n                     # zero-padded tail in HBM

    if pad_elems:
        x = jnp.pad(x, (0, pad_elems))
        t = jnp.pad(t, (0, pad_elems))
    x = x.reshape(rows, LANE)
    t = t.reshape(rows, LANE)

    # One chunk per TensorCore (1 on v5e/v6e, 2 on v7x).
    num_chunks = min(_NUM_TC if steps_total >= 2 else 1, steps_total)
    steps_per_chunk = -(-steps_total // num_chunks)
    need_guard = num_chunks * steps_per_chunk != steps_total

    strip = _pick_strip(block_rows)
    kernel = _make_kernel(block_rows, strip, steps_total, steps_per_chunk,
                          need_guard)

    if num_chunks > 1:
        dim_sem = (pltpu.CORE_PARALLEL, pltpu.ARBITRARY)   # real 2-TC split (v7x)
    else:
        dim_sem = (pltpu.ARBITRARY, pltpu.ARBITRARY)

    # 2 inputs x 2 pipeline buffers + strip temporaries; v5e's default scoped
    # limit (16 MiB) is too small for 4 MiB tiles, so raise it explicitly.
    in_bytes = block_rows * LANE * (x.dtype.itemsize + t.dtype.itemsize)
    vmem_limit = min(48 * 1024 * 1024,
                     max(32 * 1024 * 1024, 2 * in_bytes + 8 * 1024 * 1024))

    def idx_map(c, s):
        return (jnp.minimum(c * steps_per_chunk + s, steps_total - 1), 0)

    in_spec = pl.BlockSpec((block_rows, LANE), idx_map)

    partials = pl.pallas_call(
        kernel,
        out_shape=jax.ShapeDtypeStruct(
            (num_chunks, 4, SUBLANE, LANE), jnp.float32),
        grid=(num_chunks, steps_per_chunk),
        in_specs=[in_spec, in_spec],
        out_specs=pl.BlockSpec((1, 4, SUBLANE, LANE),
                               lambda c, s: (c, 0, 0, 0)),
        compiler_params=pltpu.CompilerParams(
            dimension_semantics=dim_sem,
            vmem_limit_bytes=vmem_limit),
    )(x, t)

    # Final (tiny) cross-lane reduction in plain JAX.
    sums = jnp.sum(partials, axis=(0, 2, 3))
    bce_sum, intersection, sig_sum, tgt_sum = sums[0], sums[1], sums[2], sums[3]

    if pad_elems:
        # Padded elements are (x=0, t=0): each contributes exactly log(2) to
        # the BCE sum and 0.5 to the sigmoid sum.
        bce_sum = bce_sum - jnp.float32(pad_elems * LOG2)
        sig_sum = sig_sum - jnp.float32(pad_elems * 0.5)

    bce_mean = bce_sum / n                                   # nn.BCEWithLogitsLoss (mean)
    dice = (2.0 * intersection + smooth) / (sig_sum + tgt_sum + smooth)
    dice_loss = 1.0 - dice                                   # DiceLoss

    # TODO(synk): TopoLoss (CubicalComplex persistence diagrams + Wasserstein
    # distance) has no Pallas/TPU equivalent; its contribution is omitted (0).
    topo_loss = jnp.float32(0.0)

    return alpha * bce_mean + beta * dice_loss + gamma * topo_loss


def _reference(inputs, targets, smooth=1e-6):
    """Plain-JAX reference of the BCE + Dice part (for sanity checking)."""
    x = inputs.reshape(-1).astype(jnp.float32)
    t = targets.reshape(-1).astype(jnp.float32)
    bce = jnp.mean(jnp.maximum(x, 0.0) - x * t + jnp.log1p(jnp.exp(-jnp.abs(x))))
    s = jax.nn.sigmoid(x)
    inter = jnp.sum(s * t)
    union = jnp.sum(s) + jnp.sum(t)
    dice = (2.0 * inter + smooth) / (union + smooth)
    return 0.5 * bce + 1.0 * (1.0 - dice)


if __name__ == "__main__":
    key = jax.random.PRNGKey(0)
    k1, k2, k3, k4 = jax.random.split(key, 4)

    # Small segmentation-like problem: logits + binary targets, NCHW.
    inputs = jax.random.normal(k1, (2, 4, 16, 16), dtype=jnp.float32)
    targets = (jax.random.uniform(k2, (2, 4, 16, 16)) > 0.5).astype(jnp.float32)

    out = jax.block_until_ready(loss2_pallas(inputs, targets))
    ref = _reference(inputs, targets)
    assert jnp.allclose(out, ref, rtol=1e-5, atol=1e-5), (out, ref)

    # Narrow-dtype targets (binary values are exact in bf16) — cuts HBM bytes.
    out_bf16 = jax.block_until_ready(
        loss2_pallas(inputs, targets.astype(jnp.bfloat16)))
    assert jnp.allclose(out_bf16, ref, rtol=1e-5, atol=1e-5), (out_bf16, ref)

    # Larger shape exercising the multi-step accumulating grid.
    big_x = jax.random.normal(k3, (2, 4, 384, 384), dtype=jnp.float32)
    big_t = (jax.random.uniform(k4, (2, 4, 384, 384)) > 0.5).astype(jnp.float32)
    out_big = jax.block_until_ready(loss2_pallas(big_x, big_t))
    ref_big = _reference(big_x, big_t)
    assert jnp.allclose(out_big, ref_big, rtol=1e-4, atol=1e-4), (out_big, ref_big)

    print("KERNEL_OK")
</pallas_src>

<mosaic_0001>
module attributes {stable_mosaic.version = 11 : i64} {
  func.func @kernel(%arg0: i32, %arg1: i32, %arg2: memref<16x128xf32, #tpu.memory_space<vmem>>, %arg3: memref<16x128xf32, #tpu.memory_space<vmem>>, %arg4: memref<1x4x8x128xf32, #tpu.memory_space<vmem>>) attributes {dimension_semantics = [#tpu.dimension_semantics<arbitrary>, #tpu.dimension_semantics<arbitrary>], iteration_bounds = array<i64: 1, 1>, scalar_prefetch = 0 : i64, scratch_operands = 0 : i64, tpu.core_type = #tpu.core_type<tc>, window_params = [{transform_indices = @transform_0, window_bounds = array<i64: 16, 128>}, {transform_indices = @transform_1, window_bounds = array<i64: 16, 128>}, {transform_indices = @transform_2, window_bounds = array<i64: 1, 4, 8, 128>}]} {
    %c0_i32 = arith.constant 0 : i32
    %0 = arith.cmpi eq, %arg1, %c0_i32 : i32
    %1 = arith.extui %0 : i1 to i32
    %c0_i32_0 = arith.constant 0 : i32
    %2 = arith.cmpi ne, %1, %c0_i32_0 : i32
    scf.if %2 {
      %cst_41 = arith.constant 0.000000e+00 : f32
      %68 = vector.broadcast %cst_41 : f32 to vector<1x4x8x128xf32>
      %c0_42 = arith.constant 0 : index
      %c0_43 = arith.constant 0 : index
      %c0_44 = arith.constant 0 : index
      %c0_45 = arith.constant 0 : index
      %69 = vector.load %arg4[%c0_42, %c0_43, %c0_44, %c0_45] : memref<1x4x8x128xf32, #tpu.memory_space<vmem>>, vector<1x4x8x128xf32>
      tpu.vector_store %arg4[%c0_42, %c0_43, %c0_44, %c0_45], %68 {strides = array<i32>} : memref<1x4x8x128xf32, #tpu.memory_space<vmem>>, vector<1x4x8x128xf32>,
    } else {
    }
    %cst = arith.constant 0.000000e+00 : f32
    %3 = vector.broadcast %cst : f32 to vector<8x128xf32>
    %c0_i32_1 = arith.constant 0 : i32
    %c16_i32 = arith.constant 16 : i32
    %4 = arith.muli %c0_i32_1, %c16_i32 : i32
    %5 = tpu.assume_multiple %4, 16 : i32
    %6 = arith.index_cast %5 : i32 to index
    %c0 = arith.constant 0 : index
    %7 = vector.load %arg2[%6, %c0] : memref<16x128xf32, #tpu.memory_space<vmem>>, vector<16x128xf32>
    %8 = arith.index_cast %5 : i32 to index
    %c0_2 = arith.constant 0 : index
    %9 = vector.load %arg3[%8, %c0_2] : memref<16x128xf32, #tpu.memory_space<vmem>>, vector<16x128xf32>
    %10 = math.absf %7 : vector<16x128xf32>
    %cst_3 = arith.constant 0.000000e+00 : f32
    %11 = vector.broadcast %cst_3 : f32 to vector<16x128xf32>
    %12 = arith.subf %11, %10 : vector<16x128xf32>
    %13 = math.exp %12 : vector<16x128xf32>
    %14 = math.log1p %13 : vector<16x128xf32>
    %cst_4 = arith.constant 1.000000e+00 : f32
    %15 = vector.broadcast %cst_4 : f32 to vector<16x128xf32>
    %16 = arith.addf %15, %13 : vector<16x128xf32>
    %17 = tpu.reciprocal %16 {approx = true} : vector<16x128xf32> -> vector<16x128xf32>
    %18 = arith.mulf %16, %17 : vector<16x128xf32>
    %cst_5 = arith.constant 2.000000e+00 : f32
    %19 = vector.broadcast %cst_5 : f32 to vector<16x128xf32>
    %20 = arith.subf %19, %18 : vector<16x128xf32>
    %21 = arith.mulf %17, %20 : vector<16x128xf32>
    %cst_6 = arith.constant 0.000000e+00 : f32
    %22 = vector.broadcast %cst_6 : f32 to vector<16x128xf32>
    %23 = arith.cmpf oge, %7, %22 : vector<16x128xf32>
    %24 = arith.mulf %13, %21 : vector<16x128xf32>
    %25 = arith.select %23, %21, %24 : vector<16x128xi1>, vector<16x128xf32>
    %cst_7 = arith.constant 0.000000e+00 : f32
    %26 = vector.broadcast %cst_7 : f32 to vector<16x128xf32>
    %27 = arith.maximumf %7, %26 : vector<16x128xf32>
    %28 = arith.mulf %7, %9 : vector<16x128xf32>
    %29 = arith.subf %27, %28 : vector<16x128xf32>
    %30 = arith.addf %29, %14 : vector<16x128xf32>
    %31 = vector.shape_cast %30 : vector<16x128xf32> to vector<2x8x128xf32>
    %cst_8 = arith.constant dense<0.000000e+00> : vector<8x128xf32>
    %32 = vector.multi_reduction <add>, %31, %cst_8 [0] : vector<2x8x128xf32> to vector<8x128xf32>
    %33 = arith.addf %3, %32 : vector<8x128xf32>
    %34 = arith.mulf %25, %9 : vector<16x128xf32>
    %35 = vector.shape_cast %34 : vector<16x128xf32> to vector<2x8x128xf32>
    %cst_9 = arith.constant dense<0.000000e+00> : vector<8x128xf32>
    %36 = vector.multi_reduction <add>, %35, %cst_9 [0] : vector<2x8x128xf32> to vector<8x128xf32>
    %37 = arith.addf %3, %36 : vector<8x128xf32>
    %38 = vector.shape_cast %25 : vector<16x128xf32> to vector<2x8x128xf32>
    %cst_10 = arith.constant dense<0.000000e+00> : vector<8x128xf32>
    %39 = vector.multi_reduction <add>, %38, %cst_10 [0] : vector<2x8x128xf32> to vector<8x128xf32>
    %40 = arith.addf %3, %39 : vector<8x128xf32>
    %41 = vector.shape_cast %9 : vector<16x128xf32> to vector<2x8x128xf32>
    %cst_11 = arith.constant dense<0.000000e+00> : vector<8x128xf32>
    %42 = vector.multi_reduction <add>, %41, %cst_11 [0] : vector<2x8x128xf32> to vector<8x128xf32>
    %43 = arith.addf %3, %42 : vector<8x128xf32>
    %c1_i32 = arith.constant 1 : i32
    %c0_12 = arith.constant 0 : index
    %c0_13 = arith.constant 0 : index
    %c0_14 = arith.constant 0 : index
    %c0_15 = arith.constant 0 : index
    %44 = vector.load %arg4[%c0_12, %c0_13, %c0_14, %c0_15] : memref<1x4x8x128xf32, #tpu.memory_space<vmem>>, vector<1x1x8x128xf32>
    %45 = vector.shape_cast %44 : vector<1x1x8x128xf32> to vector<8x128xf32>
    %46 = arith.addf %45, %33 : vector<8x128xf32>
    %c0_16 = arith.constant 0 : index
    %c0_17 = arith.constant 0 : index
    %c0_18 = arith.constant 0 : index
    %c0_19 = arith.constant 0 : index
    %47 = vector.load %arg4[%c0_16, %c0_17, %c0_18, %c0_19] : memref<1x4x8x128xf32, #tpu.memory_space<vmem>>, vector<1x1x8x128xf32>
    %48 = vector.shape_cast %47 : vector<1x1x8x128xf32> to vector<8x128xf32>
    %49 = vector.shape_cast %46 : vector<8x128xf32> to vector<1x1x8x128xf32>
    tpu.vector_store %arg4[%c0_16, %c0_17, %c0_18, %c0_19], %49 {strides = array<i32>} : memref<1x4x8x128xf32, #tpu.memory_space<vmem>>, vector<1x1x8x128xf32>,
    %c0_20 = arith.constant 0 : index
    %c1 = arith.constant 1 : index
    %c0_21 = arith.constant 0 : index
    %c0_22 = arith.constant 0 : index
    %50 = vector.load %arg4[%c0_20, %c1, %c0_21, %c0_22] : memref<1x4x8x128xf32, #tpu.memory_space<vmem>>, vector<1x1x8x128xf32>
    %51 = vector.shape_cast %50 : vector<1x1x8x128xf32> to vector<8x128xf32>
    %52 = arith.addf %51, %37 : vector<8x128xf32>
    %c0_23 = arith.constant 0 : index
    %c1_24 = arith.constant 1 : index
    %c0_25 = arith.constant 0 : index
    %c0_26 = arith.constant 0 : index
    %53 = vector.load %arg4[%c0_23, %c1_24, %c0_25, %c0_26] : memref<1x4x8x128xf32, #tpu.memory_space<vmem>>, vector<1x1x8x128xf32>
    %54 = vector.shape_cast %53 : vector<1x1x8x128xf32> to vector<8x128xf32>
    %55 = vector.shape_cast %52 : vector<8x128xf32> to vector<1x1x8x128xf32>
    tpu.vector_store %arg4[%c0_23, %c1_24, %c0_25, %c0_26], %55 {strides = array<i32>} : memref<1x4x8x128xf32, #tpu.memory_space<vmem>>, vector<1x1x8x128xf32>,
    %c0_27 = arith.constant 0 : index
    %c2 = arith.constant 2 : index
    %c0_28 = arith.constant 0 : index
    %c0_29 = arith.constant 0 : index
    %56 = vector.load %arg4[%c0_27, %c2, %c0_28, %c0_29] : memref<1x4x8x128xf32, #tpu.memory_space<vmem>>, vector<1x1x8x128xf32>
    %57 = vector.shape_cast %56 : vector<1x1x8x128xf32> to vector<8x128xf32>
    %58 = arith.addf %57, %40 : vector<8x128xf32>
    %c0_30 = arith.constant 0 : index
    %c2_31 = arith.constant 2 : index
    %c0_32 = arith.constant 0 : index
    %c0_33 = arith.constant 0 : index
    %59 = vector.load %arg4[%c0_30, %c2_31, %c0_32, %c0_33] : memref<1x4x8x128xf32, #tpu.memory_space<vmem>>, vector<1x1x8x128xf32>
    %60 = vector.shape_cast %59 : vector<1x1x8x128xf32> to vector<8x128xf32>
    %61 = vector.shape_cast %58 : vector<8x128xf32> to vector<1x1x8x128xf32>
    tpu.vector_store %arg4[%c0_30, %c2_31, %c0_32, %c0_33], %61 {strides = array<i32>} : memref<1x4x8x128xf32, #tpu.memory_space<vmem>>, vector<1x1x8x128xf32>,
    %c0_34 = arith.constant 0 : index
    %c3 = arith.constant 3 : index
    %c0_35 = arith.constant 0 : index
    %c0_36 = arith.constant 0 : index
    %62 = vector.load %arg4[%c0_34, %c3, %c0_35, %c0_36] : memref<1x4x8x128xf32, #tpu.memory_space<vmem>>, vector<1x1x8x128xf32>
    %63 = vector.shape_cast %62 : vector<1x1x8x128xf32> to vector<8x128xf32>
    %64 = arith.addf %63, %43 : vector<8x128xf32>
    %c0_37 = arith.constant 0 : index
    %c3_38 = arith.constant 3 : index
    %c0_39 = arith.constant 0 : index
    %c0_40 = arith.constant 0 : index
    %65 = vector.load %arg4[%c0_37, %c3_38, %c0_39, %c0_40] : memref<1x4x8x128xf32, #tpu.memory_space<vmem>>, vector<1x1x8x128xf32>
    %66 = vector.shape_cast %65 : vector<1x1x8x128xf32> to vector<8x128xf32>
    %67 = vector.shape_cast %64 : vector<8x128xf32> to vector<1x1x8x128xf32>
    tpu.vector_store %arg4[%c0_37, %c3_38, %c0_39, %c0_40], %67 {strides = array<i32>} : memref<1x4x8x128xf32, #tpu.memory_space<vmem>>, vector<1x1x8x128xf32>,
    return
  }
  func.func @transform_0(%arg0: i32, %arg1: i32) -> (i32, i32) {
    %c1_i32 = arith.constant 1 : i32
    %0 = arith.muli %arg0, %c1_i32 : i32
    %1 = arith.addi %0, %arg1 : i32
    %c0_i32 = arith.constant 0 : i32
    %2 = arith.minsi %1, %c0_i32 : i32
    %c0_i32_0 = arith.constant 0 : i32
    %c0_i32_1 = arith.constant 0 : i32
    return %2, %c0_i32_0 : i32, i32
  }
  func.func @transform_1(%arg0: i32, %arg1: i32) -> (i32, i32) {
    %c1_i32 = arith.constant 1 : i32
    %0 = arith.muli %arg0, %c1_i32 : i32
    %1 = arith.addi %0, %arg1 : i32
    %c0_i32 = arith.constant 0 : i32
    %2 = arith.minsi %1, %c0_i32 : i32
    %c0_i32_0 = arith.constant 0 : i32
    %c0_i32_1 = arith.constant 0 : i32
    return %2, %c0_i32_0 : i32, i32
  }
  func.func @transform_2(%arg0: i32, %arg1: i32) -> (i32, i32, i32, i32) {
    %c0_i32 = arith.constant 0 : i32
    %c0_i32_0 = arith.constant 0 : i32
    %c0_i32_1 = arith.constant 0 : i32
    %c0_i32_2 = arith.constant 0 : i32
    return %arg0, %c0_i32, %c0_i32_0, %c0_i32_1 : i32, i32, i32, i32
  }
}

</mosaic_0001>

<bundles_post_ra>
// kernel: loss2_pallas.1
= control target key start
LH: loop header
LB: loop body
LE: loop exit
PB: predicated region body
PF: predicated region fallthrough
CT: control target
= control target key end

     0   :  { %s248_s0 = inlined_call_operand.vmem [shape: f32[16,128], index: 0, kind: input, shape index: {}]   ;;  %s249_s1 = inlined_call_operand.vmem [shape: f32[16,128], index: 1, kind: input, shape index: {}]   ;;  %s250_s2 = inlined_call_operand.vmem [shape: f32[1,4,8,128], index: 2, kind: output, shape index: {}]  }
   0x1   :  { %v215_v0 = vld [vmem:[%s248_s0] sm:$0xff]  ;;  %v220_v1 = vld [vmem:[%s248_s0 + $0x8] sm:$0xff] }
   0x2   :  { %v87_v2 = vand.u32 2147483647, %v215_v0  ;;  %v88_v3 = vand.u32 2147483647, %v220_v1  ;;  %v85_v4 = vld [vmem:[%s249_s1] sm:$0xff]  ;;  %v86_v5 = vld [vmem:[%s249_s1 + $0x8] sm:$0xff] }
   0x3   :  { %v145_v8 = vadd.f32 %v86_v5, %v85_v4  ;;  %v129_v20 = vmax.f32 %v215_v0, 0.0  ;;  %v131_v21 = vmul.f32 %v85_v4, %v215_v0  ;;  %v130_v23 = vmax.f32 %v220_v1, 0.0 }
   0x4   :  { %v89_v6 = vsub.f32 0.0, %v87_v2  ;;  %v90_v7 = vsub.f32 0.0, %v88_v3  ;;  %v132_v24 = vmul.f32 %v86_v5, %v220_v1  ;;  %vm123_vm2 = vcmp.ge.f32.partialorder %v215_v0, 0.0 }
   0x5   :  { %183 = vst [vmem:[%s250_s2 + $0x18] sm:$0xff] %v145_v8  ;;  %v133_v28 = vsub.f32 %v129_v20, %v131_v21  ;;  %vm124_vm3 = vcmp.ge.f32.partialorder %v220_v1, 0.0 }
   0x6   :  { %v91_v9 = vmul.f32 1.442695, %v89_v6  ;;  %v93_v10 = vmul.f32 1.442695, %v90_v7  ;;  %v134_v31 = vsub.f32 %v130_v23, %v132_v24 }
   0x8   :  { %185 = vpow2.f32 %v91_v9 }
   0x9   :  { %187 = vpow2.f32 %v93_v10 }
  0x15   :  { %v186_v11 = vpop.eup %185 }
  0x16   :  { %v188_v12 = vpop.eup %187  ;;  %v95_v13 = vadd.f32 1.0, %v186_v11  ;;  %v98_v15 = vmul.f32 -0.5, %v186_v11  ;;  %v101_v18 = vand.u32 2147483647, %v186_v11 }
  0x17   :  { %v104_v14 = vadd.f32 1.0, %v188_v12  ;;  %v107_v16 = vmul.f32 -0.5, %v188_v12  ;;  %v110_v22 = vand.u32 2147483647, %v188_v12 }
  0x18   :  { %189 = vlog2.f32 %v95_v13  ;;  %v99_v17 = vadd.f32 1.0, %v98_v15  ;;  %vm102_vm0 = vcmp.lt.f32.partialorder %v101_v18, 0.0004427343 }
  0x19   :  { %191 = vlog2.f32 %v104_v14  ;;  %v108_v19 = vadd.f32 1.0, %v107_v16  ;;  %vm111_vm1 = vcmp.lt.f32.partialorder %v110_v22, 0.0004427343 }
  0x1a   :  { %193 = vrcp.f32 %v95_v13  ;;  %v100_v25 = vmul.f32 %v186_v11, %v99_v17 }
  0x1b   :  { %195 = vrcp.f32 %v104_v14  ;;  %v109_v27 = vmul.f32 %v188_v12, %v108_v19 }
  0x25   :  { %v190_v26 = vpop.eup %189 }
  0x26   :  { %v192_v29 = vpop.eup %191  ;;  %v97_v30 = vmul.f32 0.6931472, %v190_v26 }
  0x27   :  { %v194_v32 = vpop.eup %193  ;;  %v106_v33 = vmul.f32 0.6931472, %v192_v29 }
  0x28   :  { %v196_v34 = vpop.eup %195  ;;  %v103_v35 = vsel %vm102_vm0, %v100_v25, %v97_v30  ;;  %v117_v36 = vmul.f32 %v194_v32, %v95_v13 }
  0x29   :  { %v112_v37 = vsel %vm111_vm1, %v109_v27, %v106_v33  ;;  %v135_v38 = vadd.f32 %v133_v28, %v103_v35  ;;  %v118_v39 = vmul.f32 %v196_v34, %v104_v14 }
  0x2a   :  { %v136_v40 = vadd.f32 %v134_v31, %v112_v37  ;;  %v119_v41 = vsub.f32 2.0, %v117_v36 }
  0x2b   :  { %v120_v42 = vsub.f32 2.0, %v118_v39 }
  0x2c   :  { %v137_v43 = vadd.f32 %v136_v40, %v135_v38  ;;  %v121_v44 = vmul.f32 %v194_v32, %v119_v41 }
  0x2d   :  { %v122_v45 = vmul.f32 %v196_v34, %v120_v42 }
  0x2e   :  { %v125_v46 = vmul.f32 %v186_v11, %v121_v44  ;;  %149 = vst [vmem:[%s250_s2] sm:$0xff] %v137_v43 }
  0x2f   :  { %v126_v47 = vmul.f32 %v188_v12, %v122_v45 }
  0x30   :  { %v127_v48 = vsel %vm123_vm2, %v121_v44, %v125_v46 }
  0x31   :  { %v128_v49 = vsel %vm124_vm3, %v122_v45, %v126_v47  ;;  %v139_v50 = vmul.f32 %v127_v48, %v85_v4 }
  0x32   :  { %v140_v51 = vmul.f32 %v128_v49, %v86_v5  ;;  %v143_v52 = vadd.f32 %v128_v49, %v127_v48 }
  0x34   :  { %v141_v53 = vadd.f32 %v140_v51, %v139_v50  ;;  %181 = vst [vmem:[%s250_s2 + $0x10] sm:$0xff] %v143_v52 }
  0x36   :  { %179 = vst [vmem:[%s250_s2 + $0x8] sm:$0xff] %v141_v53 }

</bundles_post_ra>
